<compile_context>
chip_gen: v6e
topology: v6e:2x2x1
jax: 0.10.0
libtpu: 0.0.40
codegen_flags: <defaults>
</compile_context>

<pallas_src>
import functools

import jax
import jax.numpy as jnp
from jax import lax
from jax.experimental import pallas as pl
from jax.experimental.pallas import tpu as pltpu


def _round_up(x: int, m: int) -> int:
    return ((x + m - 1) // m) * m


def _linear_kernel(x_ref, w_ref, b_ref, o_ref, acc_ref, *, precision):
    # x_ref:   (tm, tk)   activations tile
    # w_ref:   (tn, tk)   weight tile, PyTorch [out, in] layout (NOT transposed)
    # b_ref:   (1,  tn)   bias row tile
    # o_ref:   (tm, tn)   output tile (resident across the K grid axis)
    # acc_ref: (tm, tn)   f32 VMEM accumulator scratch
    k = pl.program_id(2)

    @pl.when(k == 0)
    def _():
        acc_ref[...] = jnp.zeros_like(acc_ref)

    # Contract the last axis of both operands: acc += x @ W^T (MXU, f32 acc).
    acc_ref[...] += lax.dot_general(
        x_ref[...],
        w_ref[...],
        dimension_numbers=(((1,), (1,)), ((), ())),
        preferred_element_type=jnp.float32,
        precision=precision,
    )

    @pl.when(k == pl.num_programs(2) - 1)
    def _():
        # Bias is added once per output tile, only on the final K step.
        o_ref[...] = (acc_ref[...] + b_ref[...]).astype(o_ref.dtype)


def dummy_text_model_forward(
    x,
    weight,
    bias,
    *,
    tm: int = 256,
    tn: int = 256,
    tk: int = 512,
    compute_dtype=None,  # e.g. jnp.bfloat16 for MXU-peak path; None keeps input dtype
):
    """nn.Linear forward: y = x @ weight.T + bias.

    x:      [..., K]        (leading dims are flattened into the batch)
    weight: [N, K]           PyTorch layout [out_features, in_features]
    bias:   [N]
    returns [..., N]
    """
    orig_shape = x.shape
    K = orig_shape[-1]
    N, K2 = weight.shape
    assert K == K2, "input_dim mismatch between x and weight"
    assert bias.shape == (N,), "bias shape mismatch"

    out_dtype = x.dtype
    x2 = x.reshape(-1, K)
    M = x2.shape[0]

    if compute_dtype is not None:
        x2 = x2.astype(compute_dtype)
        weight = weight.astype(compute_dtype)
        precision = lax.Precision.DEFAULT
    else:
        # Full f32 matmul precision to match PyTorch f32 Linear semantics.
        precision = lax.Precision.HIGHEST

    # Clamp tiles to the (aligned) problem size, then pad arrays to tile
    # multiples so every block is lane/sublane aligned ((8, 128) rule).
    tm = min(tm, _round_up(M, 8))
    tn = min(tn, _round_up(N, 128))
    tk = min(tk, _round_up(K, 128))
    Mp, Np, Kp = _round_up(M, tm), _round_up(N, tn), _round_up(K, tk)

    if (Mp, Kp) != (M, K):
        x2 = jnp.pad(x2, ((0, Mp - M), (0, Kp - K)))
    if (Np, Kp) != (N, K):
        weight = jnp.pad(weight, ((0, Np - N), (0, Kp - K)))
    b2d = bias
    if Np != N:
        b2d = jnp.pad(b2d, (0, Np - N))
    b2d = b2d.reshape(1, Np).astype(jnp.float32)

    grid = (Mp // tm, Np // tn, Kp // tk)

    bytes_per_x = x2.dtype.itemsize
    bytes_per_w = weight.dtype.itemsize
    cost = pl.CostEstimate(
        flops=2 * Mp * Np * Kp,
        transcendentals=0,
        bytes_accessed=(
            Mp * Kp * bytes_per_x
            + Np * Kp * bytes_per_w
            + Mp * Np * jnp.dtype(out_dtype).itemsize
            + Np * 4
        ),
    )

    out = pl.pallas_call(
        functools.partial(_linear_kernel, precision=precision),
        out_shape=jax.ShapeDtypeStruct((Mp, Np), out_dtype),
        grid_spec=pltpu.PrefetchScalarGridSpec(
            num_scalar_prefetch=0,
            grid=grid,  # (M tiles, N tiles, K tiles) -- K innermost reduction
            in_specs=[
                pl.BlockSpec((tm, tk), lambda i, j, k: (i, k)),   # x
                pl.BlockSpec((tn, tk), lambda i, j, k: (j, k)),   # weight [N, K]
                pl.BlockSpec((1, tn), lambda i, j, k: (0, j)),    # bias row
            ],
            out_specs=pl.BlockSpec((tm, tn), lambda i, j, k: (i, j)),
            scratch_shapes=[pltpu.VMEM((tm, tn), jnp.float32)],
        ),
        compiler_params=pltpu.CompilerParams(
            dimension_semantics=("parallel", "parallel", "arbitrary"),
            vmem_limit_bytes=64 * 1024 * 1024,
        ),
        cost_estimate=cost,
    )(x2, weight, b2d)

    out = out[:M, :N]
    return out.reshape(*orig_shape[:-1], N)


if __name__ == "__main__":
    fwd = jax.jit(dummy_text_model_forward)

    key = jax.random.PRNGKey(0)

    # --- Test 1: small shapes consistent with the module (batch=8, 32 -> 32) ---
    batch, input_dim, output_dim = 8, 32, 32
    kx, kw, kb = jax.random.split(key, 3)
    bound = 1.0 / (input_dim ** 0.5)
    weight = jax.random.uniform(
        kw, (output_dim, input_dim), jnp.float32, minval=-bound, maxval=bound
    )
    bias = jax.random.uniform(
        kb, (output_dim,), jnp.float32, minval=-bound, maxval=bound
    )
    x = jax.random.normal(kx, (batch, input_dim), jnp.float32)

    y = fwd(x, weight, bias)
    jax.block_until_ready(y)
    y_ref = jnp.dot(x, weight.T, precision=lax.Precision.HIGHEST) + bias
    assert y.shape == (batch, output_dim)
    assert jnp.allclose(y, y_ref, atol=1e-5, rtol=1e-5), "small-shape mismatch"

    # --- Test 2: larger shapes to exercise the tiled (M, N, K) grid + accumulator ---
    M2, K2_, N2 = 512, 1024, 512
    kx2, kw2, kb2 = jax.random.split(jax.random.PRNGKey(1), 3)
    bound2 = 1.0 / (K2_ ** 0.5)
    w2 = jax.random.uniform(kw2, (N2, K2_), jnp.float32, minval=-bound2, maxval=bound2)
    b2 = jax.random.uniform(kb2, (N2,), jnp.float32, minval=-bound2, maxval=bound2)
    x2 = jax.random.normal(kx2, (M2, K2_), jnp.float32)

    y2 = fwd(x2, w2, b2)
    jax.block_until_ready(y2)
    y2_ref = jnp.dot(x2, w2.T, precision=lax.Precision.HIGHEST) + b2
    assert y2.shape == (M2, N2)
    assert jnp.allclose(y2, y2_ref, atol=1e-4, rtol=1e-4), "tiled-shape mismatch"

    print("KERNEL_OK")
</pallas_src>

<mosaic_0001>
module attributes {stable_mosaic.version = 11 : i64} {
  func.func @_linear_kernel(%arg0: i32, %arg1: i32, %arg2: i32, %arg3: memref<8x128xf32, #tpu.memory_space<vmem>>, %arg4: memref<128x128xf32, #tpu.memory_space<vmem>>, %arg5: memref<1x128xf32, #tpu.memory_space<vmem>>, %arg6: memref<8x128xf32, #tpu.memory_space<vmem>>, %arg7: memref<8x128xf32, #tpu.memory_space<vmem>>) attributes {dimension_semantics = [#tpu.dimension_semantics<parallel>, #tpu.dimension_semantics<parallel>, #tpu.dimension_semantics<arbitrary>], iteration_bounds = array<i64: 1, 1, 1>, scalar_prefetch = 0 : i64, scratch_operands = 1 : i64, tpu.core_type = #tpu.core_type<tc>, window_params = [{transform_indices = @transform_0, window_bounds = array<i64: 8, 128>}, {transform_indices = @transform_1, window_bounds = array<i64: 128, 128>}, {transform_indices = @transform_2, window_bounds = array<i64: 1, 128>}, {transform_indices = @transform_3, window_bounds = array<i64: 8, 128>}]} {
    %c0_i32 = arith.constant 0 : i32
    %0 = arith.cmpi eq, %arg2, %c0_i32 : i32
    %1 = arith.extui %0 : i1 to i32
    %c0_i32_0 = arith.constant 0 : i32
    %2 = arith.cmpi ne, %1, %c0_i32_0 : i32
    scf.if %2 {
      %cst_10 = arith.constant 0.000000e+00 : f32
      %12 = vector.broadcast %cst_10 : f32 to vector<8x128xf32>
      %c0_11 = arith.constant 0 : index
      %c0_12 = arith.constant 0 : index
      %13 = vector.load %arg7[%c0_11, %c0_12] : memref<8x128xf32, #tpu.memory_space<vmem>>, vector<8x128xf32>
      tpu.vector_store %arg7[%c0_11, %c0_12], %12 {strides = array<i32>} : memref<8x128xf32, #tpu.memory_space<vmem>>, vector<8x128xf32>,
    } else {
    }
    %c0 = arith.constant 0 : index
    %c0_1 = arith.constant 0 : index
    %3 = vector.load %arg7[%c0, %c0_1] : memref<8x128xf32, #tpu.memory_space<vmem>>, vector<8x128xf32>
    %c0_2 = arith.constant 0 : index
    %c0_3 = arith.constant 0 : index
    %4 = vector.load %arg3[%c0_2, %c0_3] : memref<8x128xf32, #tpu.memory_space<vmem>>, vector<8x128xf32>
    %c0_4 = arith.constant 0 : index
    %c0_5 = arith.constant 0 : index
    %5 = vector.load %arg4[%c0_4, %c0_5] : memref<128x128xf32, #tpu.memory_space<vmem>>, vector<128x128xf32>
    %cst = arith.constant dense<0.000000e+00> : vector<8x128xf32>
    %6 = tpu.matmul %4, %5, %cst {dimension_numbers = #tpu.dot_dimension_numbers<[1], [1], [0], [0], [0, 0, 1, 0], [], []>, precision = #tpu.contract_precision<fp32>} : vector<8x128xf32>, vector<128x128xf32>, vector<8x128xf32> -> vector<8x128xf32>
    %7 = arith.addf %3, %6 : vector<8x128xf32>
    %c0_6 = arith.constant 0 : index
    %c0_7 = arith.constant 0 : index
    %8 = vector.load %arg7[%c0_6, %c0_7] : memref<8x128xf32, #tpu.memory_space<vmem>>, vector<8x128xf32>
    tpu.vector_store %arg7[%c0_6, %c0_7], %7 {strides = array<i32>} : memref<8x128xf32, #tpu.memory_space<vmem>>, vector<8x128xf32>,
    %c0_i32_8 = arith.constant 0 : i32
    %9 = arith.cmpi eq, %arg2, %c0_i32_8 : i32
    %10 = arith.extui %9 : i1 to i32
    %c0_i32_9 = arith.constant 0 : i32
    %11 = arith.cmpi ne, %10, %c0_i32_9 : i32
    scf.if %11 {
      %c0_10 = arith.constant 0 : index
      %c0_11 = arith.constant 0 : index
      %12 = vector.load %arg7[%c0_10, %c0_11] : memref<8x128xf32, #tpu.memory_space<vmem>>, vector<8x128xf32>
      %c0_12 = arith.constant 0 : index
      %c0_13 = arith.constant 0 : index
      %13 = vector.load %arg5[%c0_12, %c0_13] : memref<1x128xf32, #tpu.memory_space<vmem>>, vector<1x128xf32>
      %14 = vector.broadcast %13 : vector<1x128xf32> to vector<8x128xf32>
      %15 = arith.addf %12, %14 : vector<8x128xf32>
      %c0_14 = arith.constant 0 : index
      %c0_15 = arith.constant 0 : index
      %16 = vector.load %arg6[%c0_14, %c0_15] : memref<8x128xf32, #tpu.memory_space<vmem>>, vector<8x128xf32>
      tpu.vector_store %arg6[%c0_14, %c0_15], %15 {strides = array<i32>} : memref<8x128xf32, #tpu.memory_space<vmem>>, vector<8x128xf32>,
    } else {
    }
    return
  }
  func.func @transform_0(%arg0: i32, %arg1: i32, %arg2: i32) -> (i32, i32) {
    %c0_i32 = arith.constant 0 : i32
    return %arg0, %arg2 : i32, i32
  }
  func.func @transform_1(%arg0: i32, %arg1: i32, %arg2: i32) -> (i32, i32) {
    %c0_i32 = arith.constant 0 : i32
    return %arg1, %arg2 : i32, i32
  }
  func.func @transform_2(%arg0: i32, %arg1: i32, %arg2: i32) -> (i32, i32) {
    %c0_i32 = arith.constant 0 : i32
    %c0_i32_0 = arith.constant 0 : i32
    return %c0_i32, %arg1 : i32, i32
  }
  func.func @transform_3(%arg0: i32, %arg1: i32, %arg2: i32) -> (i32, i32) {
    %c0_i32 = arith.constant 0 : i32
    return %arg0, %arg1 : i32, i32
  }
}

</mosaic_0001>

<bundles_post_ra>
// kernel: dummy_text_model_forward.1
= control target key start
LH: loop header
LB: loop body
LE: loop exit
PB: predicated region body
PF: predicated region fallthrough
CT: control target
= control target key end

     0   :  { %v1046_v3 = vmov 0.0   ;;  %vm1047_vm0 = vmmov 0   ;;  %s1489_s0 = inlined_call_operand.vmem [shape: f32[8,128], index: 0, kind: input, shape index: {}]   ;;  %s1490_s1 = inlined_call_operand.vmem [shape: f32[128,128], index: 1, kind: input, shape index: {}]   ;;  %s1491_s2 = inlined_call_operand.vmem [shape: f32[1,128], index: 2, kind: input, shape index: {}]   ;;  %s1492_s3 = inlined_call_operand.hbm [shape: f32[8,128], index: 3, kind: output, shape index: {}]  }
   0x1   :  { %v37_v0 = vld [vmem:[%s1490_s1 + $0x78] sm:$0xff]  ;;  %v36_v1 = vld [vmem:[%s1490_s1 + $0x70] sm:$0xff]  ;;  %v35_v2 = vld [vmem:[%s1490_s1 + $0x68] sm:$0xff]  ;;  %811 = vmatprep.subr.mxu0 %v1046_v3  ;;  %846 = vmatprep.subr.mxu1 %v1046_v3 }
   0x2   :  { %v1079_v4 = vand.u32 4294901760, %v37_v0  ;;  %v1081_v5 = vand.u32 4294901760, %v36_v1  ;;  %v1084_v6 = vand.u32 4294901760, %v35_v2  ;;  %v34_v7 = vld [vmem:[%s1490_s1 + $0x60] sm:$0xff]  ;;  %843 = vmatprep.mubr.msk.f32.mxu0 %vm1047_vm0, %v1046_v3  ;;  %878 = vmatprep.mubr.msk.f32.mxu1 %vm1047_vm0, %v1046_v3  ;;  %v33_v11 = vld [vmem:[%s1490_s1 + $0x58] sm:$0xff] }
   0x3   :  { %v1097_v9 = vand.u32 4294901760, %v34_v7  ;;  %v1111_v15 = vand.u32 4294901760, %v33_v11 }
   0x4   :  { %812 = vmatpush3.xpose.msra.mxu0 %v1079_v4  ;;  %v1095_v8 = vsub.f32 %v37_v0, %v1079_v4  ;;  %v1100_v10 = vsub.f32 %v36_v1, %v1081_v5  ;;  %v1106_v12 = vsub.f32 %v35_v2, %v1084_v6 }
   0x5   :  { %813 = vmatprep.subr.mxu0 %v1046_v3 }
   0x6   :  { %v132_v13 = vand.u32 4294901760, %v1095_v8  ;;  %v139_v14 = vand.u32 4294901760, %v1100_v10 }
   0x7   :  { %8 = vsyncpa [#allocation4], 0  ;;  %v146_v18 = vand.u32 4294901760, %v1106_v12  ;;  %v32_v19 = vld [vmem:[%s1490_s1 + $0x50] sm:$0xff]  ;;  %v1125_v20 = vsub.f32 %v34_v7, %v1097_v9  ;;  %v31_v26 = vld [vmem:[%s1490_s1 + $0x48] sm:$0xff]  ;;  %v1139_v27 = vsub.f32 %v33_v11, %v1111_v15  ;;  %s1048_s19 = smov [#allocation3]  }
   0x8   :  { %814 = vmatpush3.xpose.msra.mxu0 %v1081_v5  ;;  %v133_v16 = vsub.f32 %v1095_v8, %v132_v13  ;;  %v140_v17 = vsub.f32 %v1100_v10, %v139_v14  ;;  %v1128_v22 = vand.u32 4294901760, %v32_v19  ;;  %v1143_v28 = vand.u32 4294901760, %v31_v26  ;;  %v30_v32 = vld [vmem:[%s1490_s1 + $0x40] sm:$0xff]  ;;  %v29_v38 = vld [vmem:[%s1490_s1 + $0x38] sm:$0xff]  ;;  %v28_v44 = vld [vmem:[%s1490_s1 + $0x30] sm:$0xff]  ;;  %s700_s20 = sshll.u32 %s1048_s19, 4  ;;  %s701_s20 = int_to_ptr.vmem [resolvable:$true] %s700_s20 }
   0x9   :  { %815 = vmatprep.subr.mxu0 %v1046_v3  ;;  %v147_v24 = vsub.f32 %v1106_v12, %v146_v18  ;;  %v153_v25 = vand.u32 4294901760, %v1125_v20  ;;  %v160_v31 = vand.u32 4294901760, %v1139_v27  ;;  %v1158_v34 = vand.u32 4294901760, %v30_v32  ;;  %v27_v50 = vld [vmem:[%s1490_s1 + $0x28] sm:$0xff]  ;;  %v26_v56 = vld [vmem:[%s1490_s1 + $0x20] sm:$0xff]  ;;  %v25_v62 = vld [vmem:[%s1490_s1 + $0x18] sm:$0xff]  ;;  %p1029_p1 = scmp.lt.s32.totalorder %s701_s20, %s701_s20 }
   0xa   :  { %v134_v21 = vand.u32 4294901760, %v133_v16  ;;  %v141_v23 = vand.u32 4294901760, %v140_v17  ;;  %v1154_v33 = vsub.f32 %v32_v19, %v1128_v22  ;;  %v1169_v39 = vsub.f32 %v31_v26, %v1143_v28  ;;  %v24_v11 = vld [vmem:[%s1490_s1 + $0x10] sm:$0xff]  ;;  %s1024_s21 = scalar_lea.vmem %s701_s20, 128 }
   0xb   :  { %v148_v29 = vand.u32 4294901760, %v147_v24  ;;  %v154_v30 = vsub.f32 %v1125_v20, %v153_v25  ;;  %v161_v36 = vsub.f32 %v1139_v27, %v160_v31  ;;  %v1173_v40 = vand.u32 4294901760, %v29_v38  ;;  %v23_v24 = vld [vmem:[%s1490_s1 + $0x8] sm:$0xff]  ;;  %p1025_p0 = scmp.ne.s32.totalorder %s701_s20, %s1024_s21  ;;  %p1030_p2 = scmp.lt.s32.totalorder %s1024_s21, %s1024_s21 }
   0xc   :  { %816 = vmatpush3.xpose.msra.mxu0 %v1084_v6  ;;  %847 = vmatpush3.xpose.msra.mxu1 %v134_v21  ;;  %v167_v37 = vand.u32 4294901760, %v1154_v33  ;;  %v174_v43 = vand.u32 4294901760, %v1169_v39  ;;  %v1184_v45 = vsub.f32 %v30_v32, %v1158_v34  ;;  %v1188_v46 = vand.u32 4294901760, %v28_v44 }
   0xd   :  { %817 = vmatprep.subr.mxu0 %v1046_v3  ;;  %848 = vmatprep.subr.mxu1 %v1046_v3  ;;  %v155_v35 = vand.u32 4294901760, %v154_v30  ;;  %v162_v41 = vand.u32 4294901760, %v161_v36  ;;  %v1199_v51 = vsub.f32 %v29_v38, %v1173_v40  ;;  %v1203_v52 = vand.u32 4294901760, %v27_v50  ;;  %p1031_p3 = por %p1030_p2, %p1029_p1 }
   0xe   :  { %v168_v42 = vsub.f32 %v1154_v33, %v167_v37  ;;  %v175_v48 = vsub.f32 %v1169_v39, %v174_v43  ;;  %v181_v49 = vand.u32 4294901760, %v1184_v45  ;;  %v1214_v57 = vsub.f32 %v28_v44, %v1188_v46 }
   0xf   :  { %v188_v55 = vand.u32 4294901760, %v1199_v51  ;;  %v1218_v58 = vand.u32 4294901760, %v26_v56  ;;  %v1229_v63 = vsub.f32 %v27_v50, %v1203_v52  ;;  %v1233_v0 = vand.u32 4294901760, %v25_v62  ;;  %p1032_p4 = pnand %p1031_p3, %p1025_p0 }
  0x10   :  { %818 = vmatpush3.xpose.msra.mxu0 %v1097_v9  ;;  %849 = vmatpush3.xpose.msra.mxu1 %v141_v23  ;;  %v169_v47 = vand.u32 4294901760, %v168_v42  ;;  %v176_v53 = vand.u32 4294901760, %v175_v48  ;;  %v182_v54 = vsub.f32 %v1184_v45, %v181_v49  ;;  %v195_v61 = vand.u32 4294901760, %v1214_v57 }
  0x11   :  { %819 = vmatprep.subr.mxu0 %v1046_v3  ;;  %850 = vmatprep.subr.mxu1 %v1046_v3  ;;  %v189_v60 = vsub.f32 %v1199_v51, %v188_v55  ;;  %v202_v7 = vand.u32 4294901760, %v1229_v63  ;;  %v1244_v16 = vsub.f32 %v26_v56, %v1218_v58  ;;  %v1248_v17 = vand.u32 4294901760, %v24_v11 }
  0x12   :  { %v183_v59 = vand.u32 4294901760, %v182_v54  ;;  %v196_v2 = vsub.f32 %v1214_v57, %v195_v61  ;;  %v1259_v26 = vsub.f32 %v25_v62, %v1233_v0  ;;  %v1266_v30 = vand.u32 4294901760, %v23_v24 }
  0x13   :  { %v190_v1 = vand.u32 4294901760, %v189_v60  ;;  %v203_v21 = vsub.f32 %v1229_v63, %v202_v7  ;;  %v209_v23 = vand.u32 4294901760, %v1244_v16  ;;  %v1279_v42 = vsub.f32 %v24_v11, %v1248_v17 }
  0x14   :  { %820 = vmatpush3.xpose.msra.mxu0 %v1111_v15  ;;  %851 = vmatpush3.xpose.msra.mxu1 %v148_v29  ;;  %v197_v19 = vand.u32 4294901760, %v196_v2  ;;  %v21_v29 = vld [vmem:[%s1489_s0] sm:$0xff]  ;;  %v216_v38 = vand.u32 4294901760, %v1259_v26  ;;  %v1294_v54 = vsub.f32 %v23_v24, %v1266_v30 }
  0x15   :  { %821 = vmatprep.subr.mxu0 %v1046_v3  ;;  %852 = vmatprep.subr.mxu1 %v1046_v3  ;;  %v1268_v32 = vand.u32 4294901760, %v21_v29  ;;  %v210_v36 = vsub.f32 %v1244_v16, %v209_v23 }
  0x16   :  { %v217_v50 = vsub.f32 %v1259_v26, %v216_v38  ;;  %v230_v62 = vand.u32 4294901760, %v1294_v54 }
  0x17   :  { %v211_v48 = vand.u32 4294901760, %v210_v36 }
  0x18   :  { %822 = vmatpush3.xpose.msra.mxu0 %v1128_v22  ;;  %853 = vmatpush3.xpose.msra.mxu1 %v155_v35  ;;  %v204_v35 = vand.u32 4294901760, %v203_v21 }
  0x19   :  { %823 = vmatprep.subr.mxu0 %v1046_v3  ;;  %854 = vmatprep.subr.mxu1 %v1046_v3 }
  0x1c   :  { %824 = vmatpush3.xpose.msra.mxu0 %v1143_v28  ;;  %855 = vmatpush3.xpose.msra.mxu1 %v162_v41  ;;  %v22_v41 = vld [vmem:[%s1490_s1] sm:$0xff] }
  0x1d   :  { %825 = vmatprep.subr.mxu0 %v1046_v3  ;;  %856 = vmatprep.subr.mxu1 %v1046_v3  ;;  %v1283_v44 = vand.u32 4294901760, %v22_v41 }
  0x20   :  { %826 = vmatpush3.xpose.msra.mxu0 %v1158_v34  ;;  %857 = vmatpush3.xpose.msra.mxu1 %v169_v47  ;;  %v1286_v47 = vsub.f32 %v21_v29, %v1268_v32 }
  0x21   :  { %827 = vmatprep.subr.mxu0 %v1046_v3  ;;  %858 = vmatprep.subr.mxu1 %v1046_v3 }
  0x22   :  { %v121_v56 = vand.u32 4294901760, %v1286_v47 }
  0x24   :  { %828 = vmatpush3.xpose.msra.mxu0 %v1173_v40  ;;  %859 = vmatpush3.xpose.msra.mxu1 %v176_v53  ;;  %v223_v53 = vand.u32 4294901760, %v1279_v42  ;;  %v122_v2 = vsub.f32 %v1286_v47, %v121_v56 }
  0x25   :  { %829 = vmatprep.subr.mxu0 %v1046_v3  ;;  %860 = vmatprep.subr.mxu1 %v1046_v3 }
  0x26   :  { %v224_v60 = vsub.f32 %v1279_v42, %v223_v53  ;;  %v123_v24 = vand.u32 4294901760, %v122_v2 }
  0x28   :  { %830 = vmatpush3.xpose.msra.mxu0 %v1188_v46  ;;  %861 = vmatpush3.xpose.msra.mxu1 %v183_v59  ;;  %v218_v59 = vand.u32 4294901760, %v217_v50  ;;  %v225_v11 = vand.u32 4294901760, %v224_v60 }
  0x29   :  { %831 = vmatprep.subr.mxu0 %v1046_v3  ;;  %862 = vmatprep.subr.mxu1 %v1046_v3 }
  0x2c   :  { %832 = vmatpush3.xpose.msra.mxu0 %v1203_v52  ;;  %863 = vmatpush3.xpose.msra.mxu1 %v190_v1  ;;  %v1305_v1 = vsub.f32 %v22_v41, %v1283_v44 }
  0x2d   :  { %833 = vmatprep.subr.mxu0 %v1046_v3  ;;  %864 = vmatprep.subr.mxu1 %v1046_v3 }
  0x2e   :  { %v237_v21 = vand.u32 4294901760, %v1305_v1 }
  0x30   :  { %834 = vmatpush3.xpose.msra.mxu0 %v1218_v58  ;;  %865 = vmatpush3.xpose.msra.mxu1 %v197_v19  ;;  %v231_v19 = vsub.f32 %v1294_v54, %v230_v62 }
  0x31   :  { %835 = vmatprep.subr.mxu0 %v1046_v3  ;;  %866 = vmatprep.subr.mxu1 %v1046_v3 }
  0x32   :  { %v232_v29 = vand.u32 4294901760, %v231_v19 }
  0x34   :  { %836 = vmatpush3.xpose.msra.mxu0 %v1233_v0  ;;  %867 = vmatpush3.xpose.msra.mxu1 %v204_v35  ;;  %v238_v35 = vsub.f32 %v1305_v1, %v237_v21 }
  0x35   :  { %837 = vmatprep.subr.mxu0 %v1046_v3  ;;  %868 = vmatprep.subr.mxu1 %v1046_v3 }
  0x36   :  { %v239_v36 = vand.u32 4294901760, %v238_v35 }
  0x38   :  { %838 = vmatpush3.xpose.msra.mxu0 %v1248_v17  ;;  %869 = vmatpush3.xpose.msra.mxu1 %v211_v48 }
  0x39   :  { %839 = vmatprep.subr.mxu0 %v1046_v3  ;;  %870 = vmatprep.subr.mxu1 %v1046_v3 }
  0x3c   :  { %840 = vmatpush3.xpose.msra.mxu0 %v1266_v30  ;;  %871 = vmatpush3.xpose.msra.mxu1 %v218_v59 }
  0x3d   :  { %841 = vmatprep.subr.mxu0 %v1046_v3  ;;  %872 = vmatprep.subr.mxu1 %v1046_v3 }
  0x40   :  { %842 = vmatpush3.xpose.msra.mxu0 %v1283_v44  ;;  %873 = vmatpush3.xpose.msra.mxu1 %v225_v11 }
  0x41   :  { %874 = vmatprep.subr.mxu1 %v1046_v3  ;;  %881 = vmatprep.subr.mxu0 %v1046_v3 }
  0x43   :  { %844 = vmatmul.mubr.f32.vlgmr.msra.gmra.mxu0 %v123_v24 }
  0x44   :  { %875 = vmatpush3.xpose.msra.mxu1 %v232_v29  ;;  %882 = vmatpush3.xpose.msra.mxu0 %v1095_v8 }
  0x45   :  { %876 = vmatprep.subr.mxu1 %v1046_v3  ;;  %883 = vmatprep.subr.mxu0 %v1046_v3 }
  0x46   :  { %913 = vmatprep.mubr.msk.f32.mxu0 %vm1047_vm0, %v1046_v3 }
  0x48   :  { %877 = vmatpush3.xpose.msra.mxu1 %v239_v36  ;;  %884 = vmatpush3.xpose.msra.mxu0 %v1100_v10 }
  0x49   :  { %885 = vmatprep.subr.mxu0 %v1046_v3  ;;  %916 = vmatprep.subr.mxu1 %v1046_v3 }
  0x4b   :  { %879 = vmatmul.mubr.f32.vlgmr.msra.gmra.mxu1 %v1268_v32 }
  0x4c   :  { %886 = vmatpush3.xpose.msra.mxu0 %v1106_v12  ;;  %917 = vmatpush3.xpose.msra.mxu1 %v1079_v4 }
  0x4d   :  { %887 = vmatprep.subr.mxu0 %v1046_v3  ;;  %918 = vmatprep.subr.mxu1 %v1046_v3 }
  0x4e   :  { %948 = vmatprep.mubr.msk.f32.mxu1 %vm1047_vm0, %v1046_v3 }
  0x50   :  { %888 = vmatpush3.xpose.msra.mxu0 %v1125_v20  ;;  %919 = vmatpush3.xpose.msra.mxu1 %v1081_v5 }
  0x51   :  { %889 = vmatprep.subr.mxu0 %v1046_v3  ;;  %920 = vmatprep.subr.mxu1 %v1046_v3 }
  0x54   :  { %890 = vmatpush3.xpose.msra.mxu0 %v1139_v27  ;;  %921 = vmatpush3.xpose.msra.mxu1 %v1084_v6 }
  0x55   :  { %891 = vmatprep.subr.mxu0 %v1046_v3  ;;  %922 = vmatprep.subr.mxu1 %v1046_v3 }
  0x58   :  { %892 = vmatpush3.xpose.msra.mxu0 %v1154_v33  ;;  %923 = vmatpush3.xpose.msra.mxu1 %v1097_v9 }
  0x59   :  { %893 = vmatprep.subr.mxu0 %v1046_v3  ;;  %924 = vmatprep.subr.mxu1 %v1046_v3 }
  0x5c   :  { %894 = vmatpush3.xpose.msra.mxu0 %v1169_v39  ;;  %925 = vmatpush3.xpose.msra.mxu1 %v1111_v15 }
  0x5d   :  { %895 = vmatprep.subr.mxu0 %v1046_v3  ;;  %926 = vmatprep.subr.mxu1 %v1046_v3 }
  0x60   :  { %896 = vmatpush3.xpose.msra.mxu0 %v1184_v45  ;;  %927 = vmatpush3.xpose.msra.mxu1 %v1128_v22 }
  0x61   :  { %897 = vmatprep.subr.mxu0 %v1046_v3  ;;  %928 = vmatprep.subr.mxu1 %v1046_v3 }
  0x64   :  { %898 = vmatpush3.xpose.msra.mxu0 %v1199_v51  ;;  %929 = vmatpush3.xpose.msra.mxu1 %v1143_v28 }
  0x65   :  { %899 = vmatprep.subr.mxu0 %v1046_v3  ;;  %930 = vmatprep.subr.mxu1 %v1046_v3 }
  0x68   :  { %900 = vmatpush3.xpose.msra.mxu0 %v1214_v57  ;;  %931 = vmatpush3.xpose.msra.mxu1 %v1158_v34 }
  0x69   :  { %901 = vmatprep.subr.mxu0 %v1046_v3  ;;  %932 = vmatprep.subr.mxu1 %v1046_v3 }
  0x6c   :  { %902 = vmatpush3.xpose.msra.mxu0 %v1229_v63  ;;  %933 = vmatpush3.xpose.msra.mxu1 %v1173_v40 }
  0x6d   :  { %903 = vmatprep.subr.mxu0 %v1046_v3  ;;  %934 = vmatprep.subr.mxu1 %v1046_v3 }
  0x70   :  { %904 = vmatpush3.xpose.msra.mxu0 %v1244_v16  ;;  %935 = vmatpush3.xpose.msra.mxu1 %v1188_v46 }
  0x71   :  { %905 = vmatprep.subr.mxu0 %v1046_v3  ;;  %936 = vmatprep.subr.mxu1 %v1046_v3 }
  0x74   :  { %906 = vmatpush3.xpose.msra.mxu0 %v1259_v26  ;;  %937 = vmatpush3.xpose.msra.mxu1 %v1203_v52 }
  0x75   :  { %907 = vmatprep.subr.mxu0 %v1046_v3  ;;  %938 = vmatprep.subr.mxu1 %v1046_v3 }
  0x78   :  { %908 = vmatpush3.xpose.msra.mxu0 %v1279_v42  ;;  %939 = vmatpush3.xpose.msra.mxu1 %v1218_v58 }
  0x79   :  { %909 = vmatprep.subr.mxu0 %v1046_v3  ;;  %940 = vmatprep.subr.mxu1 %v1046_v3 }
  0x7c   :  { %910 = vmatpush3.xpose.msra.mxu0 %v1294_v54  ;;  %941 = vmatpush3.xpose.msra.mxu1 %v1233_v0 }
  0x7d   :  { %911 = vmatprep.subr.mxu0 %v1046_v3  ;;  %942 = vmatprep.subr.mxu1 %v1046_v3 }
  0x80   :  { %912 = vmatpush3.xpose.msra.mxu0 %v1305_v1  ;;  %943 = vmatpush3.xpose.msra.mxu1 %v1248_v17 }
  0x81   :  { %944 = vmatprep.subr.mxu1 %v1046_v3  ;;  %951 = vmatprep.subr.mxu0 %v1046_v3 }
  0x83   :  { %914 = vmatmul.mubr.f32.vlgmr.msra.gmra.mxu0 %v1286_v47 }
  0x84   :  { %945 = vmatpush3.xpose.msra.mxu1 %v1266_v30  ;;  %952 = vmatpush3.xpose.msra.mxu0 %v132_v13 }
  0x85   :  { %946 = vmatprep.subr.mxu1 %v1046_v3  ;;  %953 = vmatprep.subr.mxu0 %v1046_v3 }
  0x86   :  { %983 = vmatprep.mubr.msk.f32.mxu0 %vm1047_vm0, %v1046_v3 }
  0x88   :  { %947 = vmatpush3.xpose.msra.mxu1 %v1283_v44  ;;  %954 = vmatpush3.xpose.msra.mxu0 %v139_v14 }
  0x89   :  { %955 = vmatprep.subr.mxu0 %v1046_v3  ;;  %986 = vmatprep.subr.mxu1 %v1046_v3 }
  0x8b   :  { %949 = vmatmul.mubr.f32.vlgmr.msra.gmra.mxu1 %v121_v56 }
  0x8c   :  { %956 = vmatpush3.xpose.msra.mxu0 %v146_v18  ;;  %987 = vmatpush3.xpose.msra.mxu1 %v1079_v4 }
  0x8d   :  { %957 = vmatprep.subr.mxu0 %v1046_v3  ;;  %988 = vmatprep.subr.mxu1 %v1046_v3 }
  0x8e   :  { %1018 = vmatprep.mubr.msk.f32.mxu1 %vm1047_vm0, %v1046_v3 }
  0x90   :  { %958 = vmatpush3.xpose.msra.mxu0 %v153_v25  ;;  %989 = vmatpush3.xpose.msra.mxu1 %v1081_v5 }
  0x91   :  { %959 = vmatprep.subr.mxu0 %v1046_v3  ;;  %990 = vmatprep.subr.mxu1 %v1046_v3 }
  0x94   :  { %960 = vmatpush3.xpose.msra.mxu0 %v160_v31  ;;  %991 = vmatpush3.xpose.msra.mxu1 %v1084_v6 }
  0x95   :  { %961 = vmatprep.subr.mxu0 %v1046_v3  ;;  %992 = vmatprep.subr.mxu1 %v1046_v3 }
  0x98   :  { %962 = vmatpush3.xpose.msra.mxu0 %v167_v37  ;;  %993 = vmatpush3.xpose.msra.mxu1 %v1097_v9 }
  0x99   :  { %963 = vmatprep.subr.mxu0 %v1046_v3  ;;  %994 = vmatprep.subr.mxu1 %v1046_v3 }
  0x9c   :  { %964 = vmatpush3.xpose.msra.mxu0 %v174_v43  ;;  %995 = vmatpush3.xpose.msra.mxu1 %v1111_v15 }
  0x9d   :  { %965 = vmatprep.subr.mxu0 %v1046_v3  ;;  %996 = vmatprep.subr.mxu1 %v1046_v3 }
  0xa0   :  { %966 = vmatpush3.xpose.msra.mxu0 %v181_v49  ;;  %997 = vmatpush3.xpose.msra.mxu1 %v1128_v22 }
  0xa1   :  { %967 = vmatprep.subr.mxu0 %v1046_v3  ;;  %998 = vmatprep.subr.mxu1 %v1046_v3 }
  0xa4   :  { %968 = vmatpush3.xpose.msra.mxu0 %v188_v55  ;;  %999 = vmatpush3.xpose.msra.mxu1 %v1143_v28 }
  0xa5   :  { %969 = vmatprep.subr.mxu0 %v1046_v3  ;;  %1000 = vmatprep.subr.mxu1 %v1046_v3 }
  0xa8   :  { %970 = vmatpush3.xpose.msra.mxu0 %v195_v61  ;;  %1001 = vmatpush3.xpose.msra.mxu1 %v1158_v34 }
  0xa9   :  { %971 = vmatprep.subr.mxu0 %v1046_v3  ;;  %1002 = vmatprep.subr.mxu1 %v1046_v3 }
  0xac   :  { %972 = vmatpush3.xpose.msra.mxu0 %v202_v7  ;;  %1003 = vmatpush3.xpose.msra.mxu1 %v1173_v40 }
  0xad   :  { %973 = vmatprep.subr.mxu0 %v1046_v3  ;;  %1004 = vmatprep.subr.mxu1 %v1046_v3 }
  0xb0   :  { %974 = vmatpush3.xpose.msra.mxu0 %v209_v23  ;;  %1005 = vmatpush3.xpose.msra.mxu1 %v1188_v46 }
  0xb1   :  { %975 = vmatprep.subr.mxu0 %v1046_v3  ;;  %1006 = vmatprep.subr.mxu1 %v1046_v3 }
  0xb4   :  { %976 = vmatpush3.xpose.msra.mxu0 %v216_v38  ;;  %1007 = vmatpush3.xpose.msra.mxu1 %v1203_v52 }
  0xb5   :  { %977 = vmatprep.subr.mxu0 %v1046_v3  ;;  %1008 = vmatprep.subr.mxu1 %v1046_v3 }
  0xb8   :  { %978 = vmatpush3.xpose.msra.mxu0 %v223_v53  ;;  %1009 = vmatpush3.xpose.msra.mxu1 %v1218_v58 }
  0xb9   :  { %979 = vmatprep.subr.mxu0 %v1046_v3  ;;  %1010 = vmatprep.subr.mxu1 %v1046_v3 }
  0xbc   :  { %980 = vmatpush3.xpose.msra.mxu0 %v230_v62  ;;  %1011 = vmatpush3.xpose.msra.mxu1 %v1233_v0 }
  0xbd   :  { %981 = vmatprep.subr.mxu0 %v1046_v3  ;;  %1012 = vmatprep.subr.mxu1 %v1046_v3 }
  0xc0   :  { %982 = vmatpush3.xpose.msra.mxu0 %v237_v21  ;;  %1013 = vmatpush3.xpose.msra.mxu1 %v1248_v17 }
  0xc1   :  { %1014 = vmatprep.subr.mxu1 %v1046_v3 }
  0xc3   :  { %984 = vmatmul.mubr.f32.vlgmr.msra.gmra.mxu0 %v1268_v32 }
  0xc4   :  { %1015 = vmatpush3.xpose.msra.mxu1 %v1266_v30 }
  0xc5   :  { %1016 = vmatprep.subr.mxu1 %v1046_v3  ;;  %v708_v3 = vld [vmem:[%s1491_s2] ss:$0 sm:$0xff] }
  0xc8   :  { %1017 = vmatpush3.xpose.msra.mxu1 %v1283_v44 }
  0xcb   :  { %1019 = vmatmul.mubr.f32.vlgmr.msra.gmra.mxu1 %v1268_v32 }
 0x103   :  { %v125_v4 = vpop.f32.mrf.mxu0 }
 0x105   :  { %v845_v5 = vpop.f32.mrf.mxu0 }
 0x10b   :  { %v276_v6 = vpop.f32.mrf.mxu1 }
 0x10c   :  { %v277_v8 = vadd.f32 %v276_v6, %v125_v4 }
 0x10d   :  { %v880_v9 = vpop.f32.mrf.mxu1 }
 0x143   :  { %v380_v10 = vpop.f32.mrf.mxu0 }
 0x144   :  { %v381_v12 = vadd.f32 %v380_v10, %v277_v8 }
 0x145   :  { %v915_v13 = vpop.f32.mrf.mxu0 }
 0x14b   :  { %v469_v14 = vpop.f32.mrf.mxu1 }
 0x14c   :  { %v470_v22 = vadd.f32 %v469_v14, %v381_v12 }
 0x14d   :  { %v950_v15 = vpop.f32.mrf.mxu1 }
 0x183   :  { %v588_v18 = vpop.f32.mrf.mxu0 }
 0x184   :  { %v589_v25 = vadd.f32 %v588_v18, %v470_v22 }
 0x185   :  { %v985_v20 = vpop.f32.mrf.mxu0 }
 0x18b   :  { %v675_v27 = vpop.f32.mrf.mxu1 }
 0x18c   :  { %v676_v28 = vadd.f32 %v675_v27, %v589_v25 }
 0x18d   :  { %v1020_v31 = vpop.f32.mrf.mxu1 }
 0x18e   :  { %v692_v33 = vadd.f32 %v708_v3, %v676_v28 }
 0x190   :  { %693 = vst [vmem:[#allocation3] sm:$0xff] %v692_v33 }
 0x191   :  { %1035 = shalt.err (!%p1032_p4)
}
 0x192   :  { %703 = dma.vmem_to_hbm [thread:$0]  %s701_s20, 128, %s1492_s3, [#allocation4]  }
 0x193   :  { %1044 = dma.done.wait [#allocation4], 128  }
 0x194   :  { %1045 = vsyncadd [#allocation4], 4294967168 }
 0x195   :  { %707 = vsyncpa [#allocation4], 1 }

</bundles_post_ra>
